<compile_context>
chip_gen: v5e
topology: v5e:2x2
jax: 0.10.0
libtpu: 0.0.40
codegen_flags: <defaults>
</compile_context>

<pallas_src>
import jax
import jax.numpy as jnp
import numpy as np
from jax.experimental import pallas as pl
from jax.experimental.pallas import tpu as pltpu


# ---------------------------------------------------------------------------
# elementwise helpers
# ---------------------------------------------------------------------------
def _elu(z, alpha=1.0):
    # reference-only ELU (overflow-safe)
    return jnp.where(z > 0, z, alpha * (jnp.exp(jnp.minimum(z, 0.0)) - 1.0))


def _split_elu(v, alpha=1.0):
    """Return (elu(v), elu(-v)) using a single exp per element."""
    e = alpha * (jnp.exp(-jnp.abs(v)) - 1.0)   # elu of the non-positive branch
    pos = v > 0
    return jnp.where(pos, v, e), jnp.where(pos, e, -v)


# ---------------------------------------------------------------------------
# Pallas kernels (channels-first (C, TS) tiles: channels on sublanes, spatial on lanes)
# ---------------------------------------------------------------------------
def _make_merged_kernel(c):
    """Merged-matmul kernel: 2 MXU passes per tile.  Requires C % 8 == 0 and AC % 8 == 0
    so every sublane concat / row split is 8-aligned."""

    def kernel(x_ref, aux_ref, w1_ref, b1_ref, w2_ref, b2_ref, out_ref):
        # conv1(ConcatELU(x)) + skip(ConcatELU(aux)) as ONE matmul:
        #   [W1 | Ws] @ [elu(x); elu(-x); elu(aux); elu(-aux)]
        ex_p, ex_n = _split_elu(x_ref[...])
        ea_p, ea_n = _split_elu(aux_ref[...])
        cat1 = jnp.concatenate([ex_p, ex_n, ea_p, ea_n], axis=0)      # (2C+2AC, TS)
        h = jnp.dot(w1_ref[...], cat1,
                    preferred_element_type=jnp.float32) + b1_ref[...]  # (C, TS)

        # ConcatELU; Dropout2d identity in eval; conv2 as one matmul, then a
        # sublane row-split for the two output chunks.
        eh_p, eh_n = _split_elu(h)
        cat2 = jnp.concatenate([eh_p, eh_n], axis=0)                   # (2C, TS)
        y = jnp.dot(w2_ref[...], cat2,
                    preferred_element_type=jnp.float32) + b2_ref[...]  # (2C, TS)
        y1 = y[:c]
        y2 = y[c:]

        # residual: re-read x_ref here (keeps x's live range out of the matmuls)
        out_ref[...] = (x_ref[...] + y1 * jax.nn.sigmoid(y2)).astype(out_ref.dtype)

    return kernel


def _gated_resnet_kernel_split(x_ref, aux_ref,
                               w1a_ref, w1b_ref, wsa_ref, wsb_ref, b1_ref,
                               w2aa_ref, w2ab_ref, w2ba_ref, w2bb_ref,
                               b2a_ref, b2b_ref,
                               out_ref):
    """Split-weight fallback for tiny / non-8-multiple C (no sublane concats)."""
    ex_p, ex_n = _split_elu(x_ref[...])
    ea_p, ea_n = _split_elu(aux_ref[...])
    h = (jnp.dot(w1a_ref[...], ex_p, preferred_element_type=jnp.float32)
         + jnp.dot(w1b_ref[...], ex_n, preferred_element_type=jnp.float32)
         + jnp.dot(wsa_ref[...], ea_p, preferred_element_type=jnp.float32)
         + jnp.dot(wsb_ref[...], ea_n, preferred_element_type=jnp.float32)
         + b1_ref[...])                                                # b1+bs folded

    eh_p, eh_n = _split_elu(h)
    y1 = (jnp.dot(w2aa_ref[...], eh_p, preferred_element_type=jnp.float32)
          + jnp.dot(w2ab_ref[...], eh_n, preferred_element_type=jnp.float32)
          + b2a_ref[...])
    y2 = (jnp.dot(w2ba_ref[...], eh_p, preferred_element_type=jnp.float32)
          + jnp.dot(w2bb_ref[...], eh_n, preferred_element_type=jnp.float32)
          + b2b_ref[...])

    out_ref[...] = (x_ref[...] + y1 * jax.nn.sigmoid(y2)).astype(out_ref.dtype)


# ---------------------------------------------------------------------------
# per-generation VMEM budget + spatial tile selection
# ---------------------------------------------------------------------------
def _vmem_limit_bytes():
    """Single source of truth for the scoped VMEM limit (also feeds the tile picker)."""
    cap = None
    try:
        cap = getattr(pltpu.get_tpu_info(), "vmem_capacity_bytes", None)
    except Exception:
        cap = None
    if not cap:
        cap = 64 << 20          # conservative fallback: v7x per-TensorCore VMEM
    # 60% of physical, hard-capped at 96 MiB:
    #   v5e/v6e (128 MiB) -> ~77 MiB, v7x (64 MiB) -> ~38 MiB (< its 48 MiB guidance).
    return int(min(int(cap) * 6 // 10, 96 << 20))


def _round_up(x, m):
    return ((x + m - 1) // m) * m


def _pick_spatial_tile(hw, c, ac, tile_budget_bytes, n_batch):
    """Largest lane-dense spatial tile (multiple of 128, or full H*W) fitting the budget,
    capped so that v7x's two TensorCores each get at least one program."""
    # f32 bytes per spatial column: double-buffered x/aux/out pipeline blocks plus
    # in-kernel temporaries (elu halves, concat buffers, h, y, gate).
    per_col = 4 * (2 * (2 * c + ac) + 8 * c + 4 * ac)
    cap_cols = max(128, tile_budget_bytes // per_col)

    if hw <= cap_cols:
        ts = hw                                   # whole spatial extent, full-dim block
    else:
        ts = max(128, (cap_cols // 128) * 128)    # largest 128-multiple within budget

    # Megacore: guarantee >= 2 programs when the spatial extent allows it.
    if n_batch * pl.cdiv(hw, ts) < 2 and hw > 128:
        ts = max(128, _round_up(pl.cdiv(hw, 2), 128))   # always < hw for hw > 128
    return ts


# ---------------------------------------------------------------------------
# wrapper (NCHW in, NCHW out — no transposes, only free reshapes)
# ---------------------------------------------------------------------------
def gated_resnet_forward(x_nchw, aux_nchw, pt_params):
    N, C, H, W = x_nchw.shape
    AC = aux_nchw.shape[1]
    HW = H * W
    M = N * HW

    W1, b1, Ws, bs, W2, b2 = pt_params       # W1:(C,2C) Ws:(C,2AC) W2:(2C,2C)
    bcat = b1 + bs                            # conv1 bias + skip bias folded

    # --- single VMEM number drives both the compiler limit and the tile picker ---
    vmem_limit = _vmem_limit_bytes()
    w_elems = W1.size + Ws.size + W2.size + b1.size + bs.size + b2.size
    w_bytes_resident = 4 * int(w_elems) * 2               # double-buffered weight blocks
    tile_budget = max(1 << 20, vmem_limit - w_bytes_resident - (4 << 20))  # scratch headroom

    ts = _pick_spatial_tile(HW, C, AC, tile_budget, N)
    grid = (N, pl.cdiv(HW, ts))                            # ragged last spatial tile OK

    x3 = x_nchw.reshape(N, C, HW)                          # pure reshape, no data movement
    aux3 = aux_nchw.reshape(N, AC, HW)

    x_spec = pl.BlockSpec((None, C, ts), lambda n, s: (n, 0, s))
    aux_spec = pl.BlockSpec((None, AC, ts), lambda n, s: (n, 0, s))
    out_spec = pl.BlockSpec((None, C, ts), lambda n, s: (n, 0, s))

    def wspec(shape):
        nd = len(shape)
        return pl.BlockSpec(shape, lambda n, s, _nd=nd: (0,) * _nd)

    cost = pl.CostEstimate(
        flops=int(2 * M * (C * (2 * C + 2 * AC) + 2 * C * 2 * C)),
        transcendentals=int(M * (3 * C + AC)),
        bytes_accessed=int(4 * (M * (2 * C + AC) + w_elems)),
    )

    merged = (C % 8 == 0) and (AC % 8 == 0)
    if merged:
        # 2 matmuls / 6 operands: [W1|Ws], folded bias, W2, b2.
        kernel = _make_merged_kernel(C)
        weights = (jnp.concatenate([W1, Ws], axis=1),      # (C, 2C+2AC)
                   bcat[:, None],                           # (C, 1)
                   W2,                                      # (2C, 2C)
                   b2[:, None])                             # (2C, 1)
    else:
        # tiny / non-8-multiple C: split-weight form (no misaligned sublane concats).
        kernel = _gated_resnet_kernel_split
        weights = (W1[:, :C], W1[:, C:], Ws[:, :AC], Ws[:, AC:], bcat[:, None],
                   W2[:C, :C], W2[:C, C:], W2[C:, :C], W2[C:, C:],
                   b2[:C, None], b2[C:, None])
    w_specs = [wspec(w.shape) for w in weights]

    out3 = pl.pallas_call(
        kernel,
        out_shape=jax.ShapeDtypeStruct((N, C, HW), x_nchw.dtype),
        grid_spec=pltpu.PrefetchScalarGridSpec(
            num_scalar_prefetch=0,
            grid=grid,
            in_specs=[x_spec, aux_spec] + w_specs,
            out_specs=out_spec,
        ),
        compiler_params=pltpu.CompilerParams(
            dimension_semantics=("parallel", "parallel"),
            vmem_limit_bytes=int(vmem_limit),
        ),
        cost_estimate=cost,
    )(x3, aux3, *weights)

    return out3.reshape(N, C, H, W)


# ---------------------------------------------------------------------------
# deterministic parameter construction (weight-normed 1x1 convs)
# ---------------------------------------------------------------------------
def make_wn_conv1x1(key, in_ch, out_ch):
    """weight_norm(nn.Conv2d(in_ch, out_ch, 1)): W = g * v / ||v||_row, shape (out, in)."""
    kv, kg, kb = jax.random.split(key, 3)
    v = jax.random.normal(kv, (out_ch, in_ch), jnp.float32) * 0.2
    g = 1.0 + 0.1 * jax.random.normal(kg, (out_ch,), jnp.float32)
    b = 0.1 * jax.random.normal(kb, (out_ch,), jnp.float32)
    w = g[:, None] * v / jnp.linalg.norm(v, axis=1, keepdims=True)
    return w, b


# ---------------------------------------------------------------------------
# pure-JAX NCHW reference (mirrors the PyTorch module exactly, eval mode)
# ---------------------------------------------------------------------------
def ref_forward_nchw(x, aux, pt_params):
    W1, b1, Ws, bs, W2, b2 = pt_params
    celu = lambda v: jnp.concatenate([_elu(v), _elu(-v)], axis=1)
    h = jnp.einsum('oi,nihw->nohw', W1, celu(x)) + b1[None, :, None, None]
    h = h + jnp.einsum('oi,nihw->nohw', Ws, celu(aux)) + bs[None, :, None, None]
    y = jnp.einsum('oi,nihw->nohw', W2, celu(h)) + b2[None, :, None, None]
    C = x.shape[1]
    y1, y2 = y[:, :C], y[:, C:]
    return x + y1 * jax.nn.sigmoid(y2)


if __name__ == "__main__":
    def run_case(N, C, H, W, aux_enl, key):
        AC = aux_enl * C
        kx, ka, k1, k2, k3 = jax.random.split(key, 5)
        x = jax.random.normal(kx, (N, C, H, W), jnp.float32)
        aux = jax.random.normal(ka, (N, AC, H, W), jnp.float32)
        # conv1: Conv1x1(2C -> C); skip_op: Conv1x1(2AC -> C); conv2: Conv1x1(2C -> 2C)
        W1, b1 = make_wn_conv1x1(k1, 2 * C, C)
        Ws, bs = make_wn_conv1x1(k2, 2 * AC, C)
        W2, b2 = make_wn_conv1x1(k3, 2 * C, 2 * C)
        params = (W1, b1, Ws, bs, W2, b2)

        out = jax.block_until_ready(gated_resnet_forward(x, aux, params))
        assert out.shape == (N, C, H, W)
        ref = ref_forward_nchw(x, aux, params)
        np.testing.assert_allclose(np.asarray(out), np.asarray(ref),
                                   rtol=1e-5, atol=1e-5)

    key = jax.random.PRNGKey(0)
    k1, k2 = jax.random.split(key)

    # Case 1: GatedResNet(in_channel=4, aux_enlargement=1) — tiny C -> split-weight path.
    run_case(2, 4, 16, 16, 1, k1)
    # Case 2: C multiple of 8, non-128-multiple H*W, N=1 — merged-matmul path,
    # ragged (masked) last spatial tile, and the megacore >=2-program split.
    run_case(1, 8, 12, 12, 2, k2)

    print("KERNEL_OK")
</pallas_src>

<mosaic_0001>
module attributes {stable_mosaic.version = 11 : i64} {
  func.func @_gated_resnet_kernel_split(%arg0: i32, %arg1: i32, %arg2: memref<1x4x256xf32, #tpu.memory_space<vmem>>, %arg3: memref<1x4x256xf32, #tpu.memory_space<vmem>>, %arg4: memref<4x4xf32, #tpu.memory_space<vmem>>, %arg5: memref<4x4xf32, #tpu.memory_space<vmem>>, %arg6: memref<4x4xf32, #tpu.memory_space<vmem>>, %arg7: memref<4x4xf32, #tpu.memory_space<vmem>>, %arg8: memref<4x1xf32, #tpu.memory_space<vmem>>, %arg9: memref<4x4xf32, #tpu.memory_space<vmem>>, %arg10: memref<4x4xf32, #tpu.memory_space<vmem>>, %arg11: memref<4x4xf32, #tpu.memory_space<vmem>>, %arg12: memref<4x4xf32, #tpu.memory_space<vmem>>, %arg13: memref<4x1xf32, #tpu.memory_space<vmem>>, %arg14: memref<4x1xf32, #tpu.memory_space<vmem>>, %arg15: memref<1x4x256xf32, #tpu.memory_space<vmem>>) attributes {dimension_semantics = [#tpu.dimension_semantics<parallel>, #tpu.dimension_semantics<parallel>], iteration_bounds = array<i64: 2, 1>, scalar_prefetch = 0 : i64, scratch_operands = 0 : i64, tpu.core_type = #tpu.core_type<tc>, window_params = [{transform_indices = @transform_0, window_bounds = array<i64: 1, 4, 256>}, {transform_indices = @transform_1, window_bounds = array<i64: 1, 4, 256>}, {pipeline_mode = #tpu.pipeline_mode<synchronous>, transform_indices = @transform_2, window_bounds = array<i64: 4, 4>}, {pipeline_mode = #tpu.pipeline_mode<synchronous>, transform_indices = @transform_3, window_bounds = array<i64: 4, 4>}, {pipeline_mode = #tpu.pipeline_mode<synchronous>, transform_indices = @transform_4, window_bounds = array<i64: 4, 4>}, {pipeline_mode = #tpu.pipeline_mode<synchronous>, transform_indices = @transform_5, window_bounds = array<i64: 4, 4>}, {pipeline_mode = #tpu.pipeline_mode<synchronous>, transform_indices = @transform_6, window_bounds = array<i64: 4, 1>}, {pipeline_mode = #tpu.pipeline_mode<synchronous>, transform_indices = @transform_7, window_bounds = array<i64: 4, 4>}, {pipeline_mode = #tpu.pipeline_mode<synchronous>, transform_indices = @transform_8, window_bounds = array<i64: 4, 4>}, {pipeline_mode = #tpu.pipeline_mode<synchronous>, transform_indices = @transform_9, window_bounds = array<i64: 4, 4>}, {pipeline_mode = #tpu.pipeline_mode<synchronous>, transform_indices = @transform_10, window_bounds = array<i64: 4, 4>}, {pipeline_mode = #tpu.pipeline_mode<synchronous>, transform_indices = @transform_11, window_bounds = array<i64: 4, 1>}, {pipeline_mode = #tpu.pipeline_mode<synchronous>, transform_indices = @transform_12, window_bounds = array<i64: 4, 1>}, {transform_indices = @transform_13, window_bounds = array<i64: 1, 4, 256>}]} {
    %c0 = arith.constant 0 : index
    %c0_0 = arith.constant 0 : index
    %c0_1 = arith.constant 0 : index
    %0 = vector.load %arg2[%c0, %c0_0, %c0_1] : memref<1x4x256xf32, #tpu.memory_space<vmem>>, vector<1x4x256xf32>
    %1 = vector.shape_cast %0 : vector<1x4x256xf32> to vector<4x256xf32>
    %2 = math.absf %1 : vector<4x256xf32>
    %cst = arith.constant 0.000000e+00 : f32
    %3 = vector.broadcast %cst : f32 to vector<4x256xf32>
    %4 = arith.subf %3, %2 : vector<4x256xf32>
    %5 = math.exp %4 : vector<4x256xf32>
    %cst_2 = arith.constant 1.000000e+00 : f32
    %6 = vector.broadcast %cst_2 : f32 to vector<4x256xf32>
    %7 = arith.subf %5, %6 : vector<4x256xf32>
    %cst_3 = arith.constant 1.000000e+00 : f32
    %8 = vector.broadcast %cst_3 : f32 to vector<4x256xf32>
    %9 = arith.mulf %8, %7 : vector<4x256xf32>
    %cst_4 = arith.constant 0.000000e+00 : f32
    %10 = vector.broadcast %cst_4 : f32 to vector<4x256xf32>
    %11 = arith.cmpf ogt, %1, %10 : vector<4x256xf32>
    %12 = arith.select %11, %1, %9 : vector<4x256xi1>, vector<4x256xf32>
    %cst_5 = arith.constant 0.000000e+00 : f32
    %13 = vector.broadcast %cst_5 : f32 to vector<4x256xf32>
    %14 = arith.subf %13, %1 : vector<4x256xf32>
    %15 = arith.select %11, %9, %14 : vector<4x256xi1>, vector<4x256xf32>
    %c0_6 = arith.constant 0 : index
    %c0_7 = arith.constant 0 : index
    %c0_8 = arith.constant 0 : index
    %16 = vector.load %arg3[%c0_6, %c0_7, %c0_8] : memref<1x4x256xf32, #tpu.memory_space<vmem>>, vector<1x4x256xf32>
    %17 = vector.shape_cast %16 : vector<1x4x256xf32> to vector<4x256xf32>
    %18 = math.absf %17 : vector<4x256xf32>
    %cst_9 = arith.constant 0.000000e+00 : f32
    %19 = vector.broadcast %cst_9 : f32 to vector<4x256xf32>
    %20 = arith.subf %19, %18 : vector<4x256xf32>
    %21 = math.exp %20 : vector<4x256xf32>
    %cst_10 = arith.constant 1.000000e+00 : f32
    %22 = vector.broadcast %cst_10 : f32 to vector<4x256xf32>
    %23 = arith.subf %21, %22 : vector<4x256xf32>
    %cst_11 = arith.constant 1.000000e+00 : f32
    %24 = vector.broadcast %cst_11 : f32 to vector<4x256xf32>
    %25 = arith.mulf %24, %23 : vector<4x256xf32>
    %cst_12 = arith.constant 0.000000e+00 : f32
    %26 = vector.broadcast %cst_12 : f32 to vector<4x256xf32>
    %27 = arith.cmpf ogt, %17, %26 : vector<4x256xf32>
    %28 = arith.select %27, %17, %25 : vector<4x256xi1>, vector<4x256xf32>
    %cst_13 = arith.constant 0.000000e+00 : f32
    %29 = vector.broadcast %cst_13 : f32 to vector<4x256xf32>
    %30 = arith.subf %29, %17 : vector<4x256xf32>
    %31 = arith.select %27, %25, %30 : vector<4x256xi1>, vector<4x256xf32>
    %c0_14 = arith.constant 0 : index
    %c0_15 = arith.constant 0 : index
    %32 = vector.load %arg4[%c0_14, %c0_15] : memref<4x4xf32, #tpu.memory_space<vmem>>, vector<4x4xf32>
    %cst_16 = arith.constant dense<0.000000e+00> : vector<4x256xf32>
    %33 = tpu.matmul %32, %12, %cst_16 {dimension_numbers = #tpu.dot_dimension_numbers<[1], [0], [0], [1], [0, 0, 1, 1], [], []>} : vector<4x4xf32>, vector<4x256xf32>, vector<4x256xf32> -> vector<4x256xf32>
    %c0_17 = arith.constant 0 : index
    %c0_18 = arith.constant 0 : index
    %34 = vector.load %arg5[%c0_17, %c0_18] : memref<4x4xf32, #tpu.memory_space<vmem>>, vector<4x4xf32>
    %cst_19 = arith.constant dense<0.000000e+00> : vector<4x256xf32>
    %35 = tpu.matmul %34, %15, %cst_19 {dimension_numbers = #tpu.dot_dimension_numbers<[1], [0], [0], [1], [0, 0, 1, 1], [], []>} : vector<4x4xf32>, vector<4x256xf32>, vector<4x256xf32> -> vector<4x256xf32>
    %36 = arith.addf %33, %35 : vector<4x256xf32>
    %c0_20 = arith.constant 0 : index
    %c0_21 = arith.constant 0 : index
    %37 = vector.load %arg6[%c0_20, %c0_21] : memref<4x4xf32, #tpu.memory_space<vmem>>, vector<4x4xf32>
    %cst_22 = arith.constant dense<0.000000e+00> : vector<4x256xf32>
    %38 = tpu.matmul %37, %28, %cst_22 {dimension_numbers = #tpu.dot_dimension_numbers<[1], [0], [0], [1], [0, 0, 1, 1], [], []>} : vector<4x4xf32>, vector<4x256xf32>, vector<4x256xf32> -> vector<4x256xf32>
    %39 = arith.addf %36, %38 : vector<4x256xf32>
    %c0_23 = arith.constant 0 : index
    %c0_24 = arith.constant 0 : index
    %40 = vector.load %arg7[%c0_23, %c0_24] : memref<4x4xf32, #tpu.memory_space<vmem>>, vector<4x4xf32>
    %cst_25 = arith.constant dense<0.000000e+00> : vector<4x256xf32>
    %41 = tpu.matmul %40, %31, %cst_25 {dimension_numbers = #tpu.dot_dimension_numbers<[1], [0], [0], [1], [0, 0, 1, 1], [], []>} : vector<4x4xf32>, vector<4x256xf32>, vector<4x256xf32> -> vector<4x256xf32>
    %42 = arith.addf %39, %41 : vector<4x256xf32>
    %c0_26 = arith.constant 0 : index
    %c0_27 = arith.constant 0 : index
    %43 = vector.load %arg8[%c0_26, %c0_27] : memref<4x1xf32, #tpu.memory_space<vmem>>, vector<4x1xf32>
    %44 = vector.broadcast %43 : vector<4x1xf32> to vector<4x256xf32>
    %45 = arith.addf %42, %44 : vector<4x256xf32>
    %46 = math.absf %45 : vector<4x256xf32>
    %cst_28 = arith.constant 0.000000e+00 : f32
    %47 = vector.broadcast %cst_28 : f32 to vector<4x256xf32>
    %48 = arith.subf %47, %46 : vector<4x256xf32>
    %49 = math.exp %48 : vector<4x256xf32>
    %cst_29 = arith.constant 1.000000e+00 : f32
    %50 = vector.broadcast %cst_29 : f32 to vector<4x256xf32>
    %51 = arith.subf %49, %50 : vector<4x256xf32>
    %cst_30 = arith.constant 1.000000e+00 : f32
    %52 = vector.broadcast %cst_30 : f32 to vector<4x256xf32>
    %53 = arith.mulf %52, %51 : vector<4x256xf32>
    %cst_31 = arith.constant 0.000000e+00 : f32
    %54 = vector.broadcast %cst_31 : f32 to vector<4x256xf32>
    %55 = arith.cmpf ogt, %45, %54 : vector<4x256xf32>
    %56 = arith.select %55, %45, %53 : vector<4x256xi1>, vector<4x256xf32>
    %cst_32 = arith.constant 0.000000e+00 : f32
    %57 = vector.broadcast %cst_32 : f32 to vector<4x256xf32>
    %58 = arith.subf %57, %45 : vector<4x256xf32>
    %59 = arith.select %55, %53, %58 : vector<4x256xi1>, vector<4x256xf32>
    %c0_33 = arith.constant 0 : index
    %c0_34 = arith.constant 0 : index
    %60 = vector.load %arg9[%c0_33, %c0_34] : memref<4x4xf32, #tpu.memory_space<vmem>>, vector<4x4xf32>
    %cst_35 = arith.constant dense<0.000000e+00> : vector<4x256xf32>
    %61 = tpu.matmul %60, %56, %cst_35 {dimension_numbers = #tpu.dot_dimension_numbers<[1], [0], [0], [1], [0, 0, 1, 1], [], []>} : vector<4x4xf32>, vector<4x256xf32>, vector<4x256xf32> -> vector<4x256xf32>
    %c0_36 = arith.constant 0 : index
    %c0_37 = arith.constant 0 : index
    %62 = vector.load %arg10[%c0_36, %c0_37] : memref<4x4xf32, #tpu.memory_space<vmem>>, vector<4x4xf32>
    %cst_38 = arith.constant dense<0.000000e+00> : vector<4x256xf32>
    %63 = tpu.matmul %62, %59, %cst_38 {dimension_numbers = #tpu.dot_dimension_numbers<[1], [0], [0], [1], [0, 0, 1, 1], [], []>} : vector<4x4xf32>, vector<4x256xf32>, vector<4x256xf32> -> vector<4x256xf32>
    %64 = arith.addf %61, %63 : vector<4x256xf32>
    %c0_39 = arith.constant 0 : index
    %c0_40 = arith.constant 0 : index
    %65 = vector.load %arg13[%c0_39, %c0_40] : memref<4x1xf32, #tpu.memory_space<vmem>>, vector<4x1xf32>
    %66 = vector.broadcast %65 : vector<4x1xf32> to vector<4x256xf32>
    %67 = arith.addf %64, %66 : vector<4x256xf32>
    %c0_41 = arith.constant 0 : index
    %c0_42 = arith.constant 0 : index
    %68 = vector.load %arg11[%c0_41, %c0_42] : memref<4x4xf32, #tpu.memory_space<vmem>>, vector<4x4xf32>
    %cst_43 = arith.constant dense<0.000000e+00> : vector<4x256xf32>
    %69 = tpu.matmul %68, %56, %cst_43 {dimension_numbers = #tpu.dot_dimension_numbers<[1], [0], [0], [1], [0, 0, 1, 1], [], []>} : vector<4x4xf32>, vector<4x256xf32>, vector<4x256xf32> -> vector<4x256xf32>
    %c0_44 = arith.constant 0 : index
    %c0_45 = arith.constant 0 : index
    %70 = vector.load %arg12[%c0_44, %c0_45] : memref<4x4xf32, #tpu.memory_space<vmem>>, vector<4x4xf32>
    %cst_46 = arith.constant dense<0.000000e+00> : vector<4x256xf32>
    %71 = tpu.matmul %70, %59, %cst_46 {dimension_numbers = #tpu.dot_dimension_numbers<[1], [0], [0], [1], [0, 0, 1, 1], [], []>} : vector<4x4xf32>, vector<4x256xf32>, vector<4x256xf32> -> vector<4x256xf32>
    %72 = arith.addf %69, %71 : vector<4x256xf32>
    %c0_47 = arith.constant 0 : index
    %c0_48 = arith.constant 0 : index
    %73 = vector.load %arg14[%c0_47, %c0_48] : memref<4x1xf32, #tpu.memory_space<vmem>>, vector<4x1xf32>
    %74 = vector.broadcast %73 : vector<4x1xf32> to vector<4x256xf32>
    %75 = arith.addf %72, %74 : vector<4x256xf32>
    %c0_49 = arith.constant 0 : index
    %c0_50 = arith.constant 0 : index
    %c0_51 = arith.constant 0 : index
    %76 = vector.load %arg2[%c0_49, %c0_50, %c0_51] : memref<1x4x256xf32, #tpu.memory_space<vmem>>, vector<1x4x256xf32>
    %77 = vector.shape_cast %76 : vector<1x4x256xf32> to vector<4x256xf32>
    %78 = arith.negf %75 : vector<4x256xf32>
    %79 = math.exp %78 : vector<4x256xf32>
    %cst_52 = arith.constant 1.000000e+00 : f32
    %80 = vector.broadcast %cst_52 : f32 to vector<4x256xf32>
    %81 = arith.addf %80, %79 : vector<4x256xf32>
    %82 = arith.divf %80, %81 : vector<4x256xf32>
    %83 = arith.mulf %67, %82 : vector<4x256xf32>
    %84 = arith.addf %77, %83 : vector<4x256xf32>
    %c0_53 = arith.constant 0 : index
    %c0_54 = arith.constant 0 : index
    %c0_55 = arith.constant 0 : index
    %85 = vector.load %arg15[%c0_53, %c0_54, %c0_55] : memref<1x4x256xf32, #tpu.memory_space<vmem>>, vector<1x4x256xf32>
    %86 = vector.shape_cast %85 : vector<1x4x256xf32> to vector<4x256xf32>
    %87 = vector.shape_cast %84 : vector<4x256xf32> to vector<1x4x256xf32>
    tpu.vector_store %arg15[%c0_53, %c0_54, %c0_55], %87 {strides = array<i32>} : memref<1x4x256xf32, #tpu.memory_space<vmem>>, vector<1x4x256xf32>,
    return
  }
  func.func @transform_0(%arg0: i32, %arg1: i32) -> (i32, i32, i32) {
    %c0_i32 = arith.constant 0 : i32
    %c0_i32_0 = arith.constant 0 : i32
    return %arg0, %c0_i32, %arg1 : i32, i32, i32
  }
  func.func @transform_1(%arg0: i32, %arg1: i32) -> (i32, i32, i32) {
    %c0_i32 = arith.constant 0 : i32
    %c0_i32_0 = arith.constant 0 : i32
    return %arg0, %c0_i32, %arg1 : i32, i32, i32
  }
  func.func @transform_2(%arg0: i32, %arg1: i32) -> (i32, i32) {
    %c0_i32 = arith.constant 0 : i32
    %c0_i32_0 = arith.constant 0 : i32
    %c0_i32_1 = arith.constant 0 : i32
    return %c0_i32, %c0_i32_0 : i32, i32
  }
  func.func @transform_3(%arg0: i32, %arg1: i32) -> (i32, i32) {
    %c0_i32 = arith.constant 0 : i32
    %c0_i32_0 = arith.constant 0 : i32
    %c0_i32_1 = arith.constant 0 : i32
    return %c0_i32, %c0_i32_0 : i32, i32
  }
  func.func @transform_4(%arg0: i32, %arg1: i32) -> (i32, i32) {
    %c0_i32 = arith.constant 0 : i32
    %c0_i32_0 = arith.constant 0 : i32
    %c0_i32_1 = arith.constant 0 : i32
    return %c0_i32, %c0_i32_0 : i32, i32
  }
  func.func @transform_5(%arg0: i32, %arg1: i32) -> (i32, i32) {
    %c0_i32 = arith.constant 0 : i32
    %c0_i32_0 = arith.constant 0 : i32
    %c0_i32_1 = arith.constant 0 : i32
    return %c0_i32, %c0_i32_0 : i32, i32
  }
  func.func @transform_6(%arg0: i32, %arg1: i32) -> (i32, i32) {
    %c0_i32 = arith.constant 0 : i32
    %c0_i32_0 = arith.constant 0 : i32
    %c0_i32_1 = arith.constant 0 : i32
    return %c0_i32, %c0_i32_0 : i32, i32
  }
  func.func @transform_7(%arg0: i32, %arg1: i32) -> (i32, i32) {
    %c0_i32 = arith.constant 0 : i32
    %c0_i32_0 = arith.constant 0 : i32
    %c0_i32_1 = arith.constant 0 : i32
    return %c0_i32, %c0_i32_0 : i32, i32
  }
  func.func @transform_8(%arg0: i32, %arg1: i32) -> (i32, i32) {
    %c0_i32 = arith.constant 0 : i32
    %c0_i32_0 = arith.constant 0 : i32
    %c0_i32_1 = arith.constant 0 : i32
    return %c0_i32, %c0_i32_0 : i32, i32
  }
  func.func @transform_9(%arg0: i32, %arg1: i32) -> (i32, i32) {
    %c0_i32 = arith.constant 0 : i32
    %c0_i32_0 = arith.constant 0 : i32
    %c0_i32_1 = arith.constant 0 : i32
    return %c0_i32, %c0_i32_0 : i32, i32
  }
  func.func @transform_10(%arg0: i32, %arg1: i32) -> (i32, i32) {
    %c0_i32 = arith.constant 0 : i32
    %c0_i32_0 = arith.constant 0 : i32
    %c0_i32_1 = arith.constant 0 : i32
    return %c0_i32, %c0_i32_0 : i32, i32
  }
  func.func @transform_11(%arg0: i32, %arg1: i32) -> (i32, i32) {
    %c0_i32 = arith.constant 0 : i32
    %c0_i32_0 = arith.constant 0 : i32
    %c0_i32_1 = arith.constant 0 : i32
    return %c0_i32, %c0_i32_0 : i32, i32
  }
  func.func @transform_12(%arg0: i32, %arg1: i32) -> (i32, i32) {
    %c0_i32 = arith.constant 0 : i32
    %c0_i32_0 = arith.constant 0 : i32
    %c0_i32_1 = arith.constant 0 : i32
    return %c0_i32, %c0_i32_0 : i32, i32
  }
  func.func @transform_13(%arg0: i32, %arg1: i32) -> (i32, i32, i32) {
    %c0_i32 = arith.constant 0 : i32
    %c0_i32_0 = arith.constant 0 : i32
    return %arg0, %c0_i32, %arg1 : i32, i32, i32
  }
}

</mosaic_0001>

<bundles_post_ra>
// kernel: tpu_custom_call.1
= control target key start
LH: loop header
LB: loop body
LE: loop exit
PB: predicated region body
PF: predicated region fallthrough
CT: control target
= control target key end

     0   :  { %s1907_s0 = inlined_call_operand.hbm [shape: f32[2,4,256], index: 0, kind: input, shape index: {}]   ;;  %s1908_s1 = inlined_call_operand.hbm [shape: f32[2,4,256], index: 1, kind: input, shape index: {}]   ;;  %s1909_s2 = inlined_call_operand.vmem [shape: f32[4,4], index: 2, kind: input, shape index: {}]   ;;  %s1910_s3 = inlined_call_operand.vmem [shape: f32[4,4], index: 3, kind: input, shape index: {}]   ;;  %s1911_s4 = inlined_call_operand.vmem [shape: f32[4,4], index: 4, kind: input, shape index: {}]   ;;  %s1912_s5 = inlined_call_operand.vmem [shape: f32[4,4], index: 5, kind: input, shape index: {}]   ;;  %s1913_s6 = inlined_call_operand.vmem [shape: f32[4,1], index: 6, kind: input, shape index: {}]   ;;  %s1914_s7 = inlined_call_operand.vmem [shape: f32[4,4], index: 7, kind: input, shape index: {}]   ;;  %s1915_s8 = inlined_call_operand.hbm [shape: f32[4,4], index: 8, kind: input, shape index: {}]   ;;  %s1916_s9 = inlined_call_operand.hbm [shape: f32[4,4], index: 9, kind: input, shape index: {}]   ;;  %s1917_s10 = inlined_call_operand.vmem [shape: f32[4,4], index: 10, kind: input, shape index: {}]   ;;  %s1918_s11 = inlined_call_operand.vmem [shape: f32[4,1], index: 11, kind: input, shape index: {}]   ;;  %s1919_s12 = inlined_call_operand.vmem [shape: f32[4,1], index: 12, kind: input, shape index: {}]   ;;  %s1920_s13 = inlined_call_operand.hbm [shape: f32[2,4,256], index: 13, kind: output, shape index: {}]  }
   0x1   :  { %1929 = sst [smem:[#allocation24_spill]] %s1914_s7 }
   0x2   :  { %1930 = sst [smem:[#allocation25_spill]] %s1915_s8 }
   0x3   :  { %1931 = sst [smem:[#allocation26_spill]] %s1916_s9 }
   0x4   :  { %1932 = sst [smem:[#allocation27_spill]] %s1917_s10 }
   0x5   :  { %1933 = sst [smem:[#allocation28_spill]] %s1918_s11 }
   0x6   :  { %1934 = sst [smem:[#allocation29_spill]] %s1920_s13 }
   0x7   :  { %18 = vsyncpa [#allocation3], 0 }
   0x8   :  { %20 = vsyncpa [#allocation3 + $0x1], 0 }
   0x9   :  { %21 = vsyncpa [#allocation6], 0 }
   0xa   :  { %23 = vsyncpa [#allocation6 + $0x1], 0 }
   0xb   :  { %24 = vsyncpa [#allocation9], 0 }
   0xc   :  { %25 = vsyncpa [#allocation4], 0 }
   0xd   :  { %27 = vsyncpa [#allocation4 + $0x1], 0  ;;  %s1672_s25 = smov 0   ;;  %s1674_s26 = smov 0  }
   0xe   :  { %s1676_s27 = smov 0   ;;  %s1678_s28 = smov 0  }
   0xf   :  { %s1680_s29 = smov 0   ;;  %s1682_s30 = smov 0  }
  0x10 LB: > { %1935 = sst [smem:[#allocation16_spill]] %s1577_s25  ;;  %s1703_s14 = sadd.s32 4294967295, %s1597_s30   ;;  %s1597_s30 = sphi %s1682_s30, %s33_s30   ;;  %s1593_s29 = sphi %s1680_s29, %s1961_s29   ;;  %s1589_s28 = sphi %s1678_s28, %s1960_s28   ;;  %s1585_s27 = sphi %s1676_s27, %s1959_s27   ;;  %s1581_s26 = sphi %s1674_s26, %s1963_s26   ;;  %s1577_s25 = sphi %s1672_s25, %s1962_s25  }
  0x11   : > { %1936 = sst [smem:[#allocation17_spill]] %s1585_s27  ;;  %s1213_s15 = sadd.s32 4294967294, %s1597_s30  }
  0x12   : > { %1937 = sst [smem:[#allocation18_spill]] %s1589_s28  ;;  %p67_p0 = scmp.ne.s32.totalorder %s1581_s26, %s1577_s25 }
  0x13   : > { %1938 = sst [smem:[#allocation19_spill]] %s1593_s29  ;;  %p68_p1 = scmp.eq.s32.totalorder %s1703_s14, 0 }
  0x14   : > { %p352_p2 = scmp.eq.s32.totalorder %s1703_s14, 1  ;;  %p358_p3 = scmp.eq.s32.totalorder %s1213_s15, 1 }
  0x15   : > { %p1712_p4 = por %p68_p1, %p67_p0  ;;  %p1214_p5 = scmp.ge.s32.totalorder %s1597_s30, 1 }
  0x16   : > { %p1717_p6 = por %p358_p3, %p67_p0  ;;  %p365_p7 = scmp.lt.s32.totalorder %s1597_s30, 3 }
  0x17   : > { %s1942_s8 = sld [smem:[#allocation25_spill]]  ;;  %p1217_p9 = scmp.ge.s32.totalorder %s1597_s30, 2 }
  0x18   : > { %s1940_s17 = scalar_select %p1717_p6, 1, 0 }
  0x19   : > { %p1725_p8 = pnand %p1214_p5, %p365_p7  ;;  %s1599_s22 = smov [#allocation7]  }
  0x1a   : > { %1941 = sst [smem:[#allocation20_spill]] %s1940_s17  ;;  %s397_s23 = sshll.u32 %s1599_s22, 4  ;;  %s398_s23 = int_to_ptr.vmem [resolvable:$true] %s397_s23 }
  0x1b   : > { %p1290_p10 = pneg %p1725_p8  ;;  %s1944_s9 = sld [smem:[#allocation26_spill]] }
  0x1c   : > { %s1600_s19 = smov [#allocation8]   ;;  %s45_s17 = sadd.s32 1, %s1593_s29 }
  0x1d   : > { %s395_s20 = sshll.u32 %s1942_s8, 4  ;;  %p1291_p11 = pnand %p1290_p10, %p68_p1  ;;  %s396_s20 = int_to_ptr.hbm [resolvable:$true] %s395_s20 }
  0x1e   : > { %s409_s8 = sshll.u32 %s1600_s19, 4  ;;  %s54_s22 = sadd.s32 1, %s1585_s27  ;;  %s410_s8 = int_to_ptr.vmem [resolvable:$true] %s409_s8 }
  0x1f   : > { %1293 = dma.hbm_to_vmem [thread:$0]  (!%p1291_p11), %s396_s20, 64, %s398_s23, [#allocation6]  }
  0x20   : > { %p47_p12 = scmp.ge.s32.totalorder %s45_s17, 2  ;;  %p61_p13 = scmp.ne.s32.totalorder %s1585_s27, %s1581_s26 }
  0x21   : > { %s407_s18 = sshll.u32 %s1944_s9, 4  ;;  %p62_p0 = scmp.eq.s32.totalorder %s1597_s30, 0  ;;  %s408_s18 = int_to_ptr.hbm [resolvable:$true] %s407_s18 }
  0x22   : > { %1296 = dma.hbm_to_vmem [thread:$0]  (!%p1291_p11), %s408_s18, 64, %s410_s8, [#allocation9]  }
  0x23   : > { %p1310_p3 = scmp.lt.s32.totalorder %s1597_s30, 2  ;;  %s1965_s17 = smov (%p47_p12, %s45_s17), 0 }
  0x24   : > { %1945 = sst [smem:[#allocation21_spill]] %s1965_s17  ;;  %p1745_p5 = por %p62_p0, %p61_p13 }
  0x25   : > { %p1751_p7 = por %p352_p2, %p61_p13  ;;  %s49_s8 = ssub.s32 %s1593_s29, %s1965_s17 }
  0x26   : > { %s429_s23 = sand.u32 1, %s1585_s27   ;;  %p52_p10 = scmp.eq.s32.totalorder %s49_s8, 0 }
  0x27   : > { %s1947_s20 = scalar_select %p1751_p7, 1, 0 }
  0x28   : > { %s1218_s15 = sshll.u32 %s429_s23, 3  ;;  %s1273_s18 = sshll.u32 %s1593_s29, 3 }
  0x29   : > { %1948 = sst [smem:[#allocation22_spill]] %s1947_s20  ;;  %s440_s13 = scalar_lea.hbm %s1907_s0, %s1273_s18 }
  0x2a   : > { %s1760_s19 = scalar_select %p52_p10, %s1585_s27, %s54_s22  }
  0x2b   : > { %s442_s28 = sshll.u32 %s440_s13, 4  ;;  %s433_s10 = scalar_lea.vmem [#allocation2], %s1218_s15  ;;  %s443_s28 = int_to_ptr.hbm [resolvable:$true] %s442_s28 }
  0x2c   : > { %1949 = sst [smem:[#allocation23_spill]] %s1760_s19  ;;  %s444_s7 = sshll.u32 %s433_s10, 4  ;;  %s445_s7 = int_to_ptr.vmem [resolvable:$true] %s444_s7 }
  0x2d   : > { %p1298_p2 = pnand %p1310_p3, %p1745_p5  ;;  %s462_s8 = scalar_lea.hbm %s1908_s1, %s1273_s18 }
  0x2e   : > { %s451_s11 = sand.u32 1, %s1597_s30   ;;  %s430_s29 = scalar_lea.sflag [#allocation3], %s429_s23 }
  0x2f   : > { %1300 = dma.hbm_to_vmem [thread:$0]  (!%p1298_p2), %s443_s28, 128, %s445_s7, %s430_s29  }
  0x30   : > { %s464_s22 = sshll.u32 %s462_s8, 4  ;;  %s455_s19 = scalar_lea.vmem [#allocation5], %s1218_s15  ;;  %s465_s22 = int_to_ptr.hbm [resolvable:$true] %s464_s22 }
  0x31   : > { %s466_s27 = sshll.u32 %s455_s19, 4  ;;  %s452_s9 = scalar_lea.sflag [#allocation6], %s451_s11  ;;  %s467_s27 = int_to_ptr.vmem [resolvable:$true] %s466_s27 }
  0x32   : > { %1303 = dma.hbm_to_vmem [thread:$0]  (!%p1298_p2), %s465_s22, 128, %s467_s27, %s452_s9  }
  0x33   : > { %475 = sbr.rel (%p1725_p8) target bundleno = 451 (0x1c3), region = 72  ;;  %s1776_s10 = sand.u32 (!%p1725_p8), 1, %s1581_s26  }
  0x34   : > { %s1779_s13 = sshll.u32 (!%p1725_p8), %s1776_s10, 3  ;;  %s478_s7 = scalar_lea.sflag (!%p1725_p8), [#allocation3], %s1776_s10 }
  0x35   : > { %s481_s25 = scalar_lea.vmem (!%p1725_p8), [#allocation2], %s1779_s13 }
  0x38   : > { %1556 = dma.done.wait (%p1712_p4), %s478_s7, 128  }
  0x39   : > { %1558 = vsyncadd (%p1712_p4), %s478_s7, 4294967168  ;;  %s487_s11 = sand.u32 1, %s1703_s14   ;;  %s491_s28 = scalar_lea.vmem [#allocation5], %s1779_s13 }
  0x3a   : > { %s488_s27 = scalar_lea.sflag [#allocation6], %s487_s11 }
  0x3b   : > { %1560 = dma.done.wait (%p1712_p4), %s488_s27, 128  }
  0x3c   : > { %1562 = vsyncadd (%p1712_p4), %s488_s27, 4294967168 }
  0x3d   : > { %1564 = dma.done.wait (%p68_p1), [#allocation6], 64  }
  0x3e   : > { %1566 = vsyncadd (%p68_p1), [#allocation6], 4294967232 }
  0x3f   : > { %1568 = dma.done.wait (%p68_p1), [#allocation9], 64  }
  0x40   : > { %1570 = vsyncadd (%p68_p1), [#allocation9], 4294967232  ;;  %v1801_v0 = vld [vmem:[%s481_s25] sm:$0xff]  ;;  %v563_v2 = vld [vmem:[%s491_s28] sm:$0xff]  ;;  %v1601_v13 = vmov 0   ;;  %vm583_vm1 = vcmask 1043456  }
  0x41   : > { %v554_v1 = vand.u32 2147483647, %v1801_v0  ;;  %v564_v5 = vand.u32 2147483647, %v563_v2  ;;  %v561_v7 = vsub.f32 0.0, %v1801_v0  ;;  %vm559_vm0 = vcmp.gt.f32.partialorder %v1801_v0, 0.0  ;;  %1365 = vset.pattern.permute.xlu0 %v1601_v13  ;;  %1366 = vset.pattern.permute.xlu1 %v1601_v13 }
  0x42   : > { %v787_v12 = vld [vmem:[%s1913_s6] sm:$0xf]  ;;  %vm579_vm2 = vcmask 31744   ;;  %vm569_vm3 = vcmp.gt.f32.partialorder %v563_v2, 0.0  ;;  %v571_v25 = vsub.f32 0.0, %v563_v2  ;;  %s1950_s7 = sld [smem:[#allocation28_spill]] }
  0x43   : > { %v555_v3 = vsub.f32 0.0, %v554_v1  ;;  %v565_v6 = vsub.f32 0.0, %v564_v5  ;;  %790 = vperm.xlu0 %1365, %v787_v12   ;;  %v574_v16 = vld [vmem:[%s1910_s3] sm:$0xf]  ;;  %s1951_s27 = sld [smem:[#allocation24_spill]]  ;;  %s549_s18 = scalar_lea.vmem [#allocation10], %s1779_s13 }
  0x44   : > { %v1009_v19 = vld [vmem:[%s1919_s12] sm:$0xf]  ;;  %v814_v5 = vld [vmem:[#allocation7] sm:$0xf]  ;;  %s1952_s14 = sld [smem:[#allocation27_spill]]  ;;  %s1080_s19 = sshll.u32 %s549_s18, 4  ;;  %s1081_s19 = int_to_ptr.vmem [resolvable:$true] %s1080_s19 }
  0x45   : > { %v556_v4 = vmul.f32 1.442695, %v555_v3  ;;  %v566_v9 = vmul.f32 1.442695, %v565_v6  ;;  %v573_v22 = vld [vmem:[%s1909_s2] sm:$0xf] }
  0x46   : > { %v679_v27 = vld [vmem:[%s1911_s4] sm:$0xf]  ;;  %v921_v6 = vld [vmem:[#allocation8] sm:$0xf]  ;;  %s1953_s16 = sld [smem:[#allocation18_spill]]  ;;  %s1065_s22 = scalar_lea.sflag [#allocation4], %s1776_s10 }
  0x47   : > { %1367 = vpow2.f32 %v556_v4  ;;  %v733_v30 = vld [vmem:[%s1912_s5] sm:$0xf]  ;;  %s1954_s20 = sld [smem:[#allocation29_spill]] }
  0x48   : > { %1369 = vpow2.f32 %v566_v9  ;;  %v913_v48 = vld [vmem:[%s1950_s7] sm:$0xf] }
  0x49   : > { %916 = vperm.xlu1 %1366, %v913_v48  }
  0x4b   : > { %1012 = vperm.xlu0 %1365, %v1009_v19  }
  0x4c   : > { %s1275_s17 = sshll.u32 %s1953_s16, 3 }
  0x4d   : > { %v1368_v8 = vpop.eup %1367  ;;  %s1078_s23 = scalar_lea.hbm %s1954_s20, %s1275_s17  ;;  %s1523_s13 = scalar_lea.hbm %s1954_s20, 16 }
  0x4e   : > { %v1230_v10 = vadd.f32 -1.0, %v1368_v8  ;;  %v1370_v15 = vpop.eup %1369  ;;  %s1082_s8 = sshll.u32 %s1078_s23, 4  ;;  %s1083_s8 = int_to_ptr.hbm [resolvable:$true] %s1082_s8 }
  0x4f   : > { %v1231_v20 = vadd.f32 -1.0, %v1370_v15  ;;  %s1517_s9 = sshra.s32 %s1083_s8, 4  ;;  %s1518_s9 = int_to_ptr.hbm [resolvable:$true] %s1517_s9 }
  0x50   : > { %v562_v11 = vsel %vm559_vm0, %v1230_v10, %v561_v7  ;;  %v560_v14 = vsel %vm559_vm0, %v1801_v0, %v1230_v10  ;;  %v922_v7 = vld [vmem:[%s1952_s14] sm:$0xf]  ;;  %s1519_s7 = scalar_lea.hbm %s1518_s9, 8  ;;  %p1524_p11 = scmp.lt.s32.totalorder %s1518_s9, %s1954_s20 }
  0x51   : > { %576 = vst [vmem:[#allocation1] ss:$2 sm:$0xff] %v562_v11  ;;  %v570_v21 = vsel %vm569_vm3, %v563_v2, %v1231_v20  ;;  %v572_v26 = vsel %vm569_vm3, %v1231_v20, %v571_v25  ;;  %v813_v2 = vld [vmem:[%s1951_s27] sm:$0xf]  ;;  %p1520_p1 = scmp.ne.s32.totalorder %s1518_s9, %s1519_s7  ;;  %p1525_p12 = scmp.lt.s32.totalorder %s1523_s13, %s1519_s7 }
  0x53   : > { %p1521_p4 = pnand %p1520_p1, %p1751_p7  ;;  %p1526_p13 = por %p1525_p12, %p1524_p11 }
  0x55   : > { %p1522_p8 = pneg %p1521_p4 }
  0x57   : > { %p1527_p0 = pnand %p1526_p13, %p1522_p8 }
  0x58   : > { %v577_v17 = vld.sshfl [vmem:[#allocation1] sm:$0xff pattern:$0x75316420]  ;;  %v578_v18 = vld.sshfl [vmem:[#allocation1 + $0x8] sm:$0xff pattern:$0x75316420] }
  0x59   : > { %1234 = vmatpush.msk.msra.mxu1 %vm583_vm1, %v578_v18  ;;  %629 = vst [vmem:[#allocation1] ss:$2 sm:$0xff] %v560_v14  ;;  %1232 = vmatpush.msk.msra.mxu0 %vm583_vm1, %v577_v17 }
  0x5a   : > { %1235 = vmatmul.msk.f32.vlgmr.msra.gmra.mxu1 %vm579_vm2, %v574_v16  ;;  %1233 = vmatmul.msk.f32.vlgmr.msra.gmra.mxu0 %vm579_vm2, %v574_v16 }
  0x60   : > { %v631_v23 = vld.sshfl [vmem:[#allocation1 + $0x8] sm:$0xff pattern:$0x75316420]  ;;  %v630_v24 = vld.sshfl [vmem:[#allocation1] sm:$0xff pattern:$0x75316420] }
  0x61   : > { %1238 = vmatpush.msk.msra.mxu3 %vm583_vm1, %v631_v23  ;;  %1236 = vmatpush.msk.msra.mxu2 %vm583_vm1, %v630_v24  ;;  %681 = vst [vmem:[#allocation1] ss:$2 sm:$0xff] %v570_v21 }
  0x62   : > { %1239 = vmatmul.msk.f32.vlgmr.msra.gmra.mxu3 %vm579_vm2, %v573_v22  ;;  %1237 = vmatmul.msk.f32.vlgmr.msra.gmra.mxu2 %vm579_vm2, %v573_v22 }
  0x68   : > { %v683_v28 = vld.sshfl [vmem:[#allocation1 + $0x8] sm:$0xff pattern:$0x75316420]  ;;  %v682_v29 = vld.sshfl [vmem:[#allocation1] sm:$0xff pattern:$0x75316420] }
  0x69   : > { %1242 = vmatpush.msk.msrb.mxu1 %vm583_vm1, %v683_v28  ;;  %1240 = vmatpush.msk.msrb.mxu0 %vm583_vm1, %v682_v29  ;;  %735 = vst [vmem:[#allocation1] ss:$2 sm:$0xff] %v572_v26 }
  0x6a   : > { %1243 = vmatmul.msk.f32.vlgmr.msrb.gmra.mxu1 %vm579_vm2, %v679_v27  ;;  %1241 = vmatmul.msk.f32.vlgmr.msrb.gmra.mxu0 %vm579_vm2, %v679_v27 }
  0x70   : > { %v736_v31 = vld.sshfl [vmem:[#allocation1] sm:$0xff pattern:$0x75316420]  ;;  %v737_v32 = vld.sshfl [vmem:[#allocation1 + $0x8] sm:$0xff pattern:$0x75316420] }
  0x71   : > { %1244 = vmatpush.msk.msrb.mxu2 %vm583_vm1, %v736_v31  ;;  %1246 = vmatpush.msk.msrb.mxu3 %vm583_vm1, %v737_v32 }
  0x72   : > { %1245 = vmatmul.msk.f32.vlgmr.msrb.gmra.mxu2 %vm579_vm2, %v733_v30  ;;  %1247 = vmatmul.msk.f32.vlgmr.msrb.gmra.mxu3 %vm579_vm2, %v733_v30 }
  0xb5   : > { %v791_v47 = vpop.permute.xlu0 %790 }
  0xbd   : > { %v1013_v18 = vpop.permute.xlu0 %1012 }
  0xd7   : > { %v625_v33 = vpop.f32.mrf.mxu1  ;;  %v605_v34 = vpop.f32.mrf.mxu0 }
  0xe5   : > { %v656_v35 = vpop.f32.mrf.mxu2  ;;  %v676_v36 = vpop.f32.mrf.mxu3 }
  0xe6   : > { %v677_v37 = vadd.f32 %v676_v36, %v625_v33  ;;  %v657_v38 = vadd.f32 %v656_v35, %v605_v34 }
  0xe7   : > { %v728_v39 = vpop.f32.mrf.mxu1  ;;  %v708_v40 = vpop.f32.mrf.mxu0 }
  0xe8   : > { %v732_v41 = vadd.f32 %v728_v39, %v677_v37  ;;  %v731_v42 = vadd.f32 %v708_v40, %v657_v38  ;;  %v917_v40 = vpop.permute.xlu1 %916 }
  0xf5   : > { %v762_v43 = vpop.f32.mrf.mxu2  ;;  %v782_v44 = vpop.f32.mrf.mxu3 }
  0xf6   : > { %v785_v45 = vadd.f32 %v762_v43, %v731_v42  ;;  %v786_v46 = vadd.f32 %v782_v44, %v732_v41 }
  0xf8   : > { %v793_v49 = vadd.f32 %v791_v47, %v785_v45  ;;  %v794_v50 = vadd.f32 %v791_v47, %v786_v46 }
  0xfa   : > { %v795_v51 = vand.u32 2147483647, %v793_v49  ;;  %v796_v52 = vand.u32 2147483647, %v794_v50  ;;  %v809_v60 = vsub.f32 0.0, %v793_v49  ;;  %vm805_vm4 = vcmp.gt.f32.partialorder %v793_v49, 0.0 }
  0xfb   : > { %v810_v62 = vsub.f32 0.0, %v794_v50  ;;  %vm806_vm5 = vcmp.gt.f32.partialorder %v794_v50, 0.0 }
  0xfc   : > { %v797_v53 = vsub.f32 0.0, %v795_v51  ;;  %v798_v54 = vsub.f32 0.0, %v796_v52 }
  0xfe   : > { %v799_v55 = vmul.f32 1.442695, %v797_v53  ;;  %v801_v56 = vmul.f32 1.442695, %v798_v54 }
 0x100   : > { %1371 = vpow2.f32 %v799_v55 }
 0x101   : > { %1373 = vpow2.f32 %v801_v56 }
 0x106   : > { %v1372_v57 = vpop.eup %1371 }
 0x107   : > { %v1374_v58 = vpop.eup %1373  ;;  %v1248_v59 = vadd.f32 -1.0, %v1372_v57 }
 0x108   : > { %v1249_v61 = vadd.f32 -1.0, %v1374_v58 }
 0x109   : > { %v811_v63 = vsel %vm805_vm4, %v1248_v59, %v809_v60  ;;  %v807_v1 = vsel %vm805_vm4, %v793_v49, %v1248_v59 }
 0x10a   : > { %1250 = vmatpush.msk.msra.mxu0 %vm583_vm1, %v811_v63  ;;  %v812_v3 = vsel %vm806_vm5, %v1249_v61, %v810_v62  ;;  %1254 = vmatpush.msk.msra.mxu2 %vm583_vm1, %v807_v1  ;;  %v808_v4 = vsel %vm806_vm5, %v794_v50, %v1249_v61 }
 0x10b   : > { %1252 = vmatpush.msk.msra.mxu1 %vm583_vm1, %v812_v3  ;;  %1256 = vmatpush.msk.msra.mxu3 %vm583_vm1, %v808_v4 }
 0x10c   : > { %1255 = vmatmul.msk.f32.vlgmr.msra.gmra.mxu2 %vm579_vm2, %v813_v2  ;;  %1257 = vmatmul.msk.f32.vlgmr.msra.gmra.mxu3 %vm579_vm2, %v813_v2 }
 0x10d   : > { %1258 = vmatpush.msk.msrb.mxu0 %vm583_vm1, %v811_v63  ;;  %1260 = vmatpush.msk.msrb.mxu1 %vm583_vm1, %v812_v3 }
 0x10e   : > { %1262 = vmatpush.msk.msrb.mxu2 %vm583_vm1, %v807_v1  ;;  %1264 = vmatpush.msk.msrb.mxu3 %vm583_vm1, %v808_v4 }
 0x10f   : > { %1251 = vmatmul.msk.f32.vlgmr.msra.gmra.mxu0 %vm579_vm2, %v814_v5  ;;  %1253 = vmatmul.msk.f32.vlgmr.msra.gmra.mxu1 %vm579_vm2, %v814_v5 }
 0x114   : > { %1263 = vmatmul.msk.f32.vlgmr.msrb.gmra.mxu2 %vm579_vm2, %v921_v6  ;;  %1265 = vmatmul.msk.f32.vlgmr.msrb.gmra.mxu3 %vm579_vm2, %v921_v6 }
 0x117   : > { %1259 = vmatmul.msk.f32.vlgmr.msrb.gmra.mxu0 %vm579_vm2, %v922_v7  ;;  %1261 = vmatmul.msk.f32.vlgmr.msrb.gmra.mxu1 %vm579_vm2, %v922_v7 }
 0x18c   : > { %v841_v8 = vpop.f32.mrf.mxu0  ;;  %v861_v9 = vpop.f32.mrf.mxu1 }
 0x18f   : > { %v890_v10 = vpop.f32.mrf.mxu2  ;;  %v910_v11 = vpop.f32.mrf.mxu3 }
 0x190   : > { %v911_v32 = vadd.f32 %v910_v11, %v861_v9  ;;  %v891_v42 = vadd.f32 %v890_v10, %v841_v8 }
 0x192   : > { %v920_v47 = vadd.f32 %v917_v40, %v911_v32  ;;  %v919_v51 = vadd.f32 %v917_v40, %v891_v42 }
 0x194   : > { %v943_v12 = vpop.f32.mrf.mxu0  ;;  %v963_v13 = vpop.f32.mrf.mxu1 }
 0x197   : > { %v986_v14 = vpop.f32.mrf.mxu2  ;;  %v1006_v15 = vpop.f32.mrf.mxu3 }
 0x198   : > { %v987_v16 = vadd.f32 %v986_v14, %v943_v12  ;;  %v1007_v17 = vadd.f32 %v1006_v15, %v963_v13 }
 0x19a   : > { %v1015_v19 = vadd.f32 %v1013_v18, %v987_v16  ;;  %v1016_v20 = vadd.f32 %v1013_v18, %v1007_v17 }
 0x19c   : > { %v1266_v21 = vmul.f32 -1.442695, %v1015_v19  ;;  %v1267_v22 = vmul.f32 -1.442695, %v1016_v20 }
 0x19e   : > { %1375 = vpow2.f32 %v1266_v21 }
 0x19f   : > { %1377 = vpow2.f32 %v1267_v22 }
 0x1a4   : > { %v1376_v23 = vpop.eup %1375 }
 0x1a5   : > { %v1378_v24 = vpop.eup %1377  ;;  %v1023_v25 = vadd.f32 1.0, %v1376_v23 }
 0x1a6   : > { %v1024_v26 = vadd.f32 1.0, %v1378_v24 }
 0x1a7   : > { %1379 = vrcp.f32 %v1023_v25  ;;  %v1036_v35 = vand.u32 2147483648, %v1023_v25  ;;  %v1034_v37 = vand.u32 2147483647, %v1023_v25  ;;  %vm1030_vm8 = vweird.f32 %v1023_v25 }
 0x1a8   : > { %1381 = vrcp.f32 %v1024_v26  ;;  %v1051_v36 = vand.u32 2147483648, %v1024_v26  ;;  %v1049_v39 = vand.u32 2147483647, %v1024_v26  ;;  %vm1045_vm10 = vweird.f32 %v1024_v26 }
 0x1a9   : > { %v1037_v45 = vor.u32 1.1754944e-38, %v1036_v35  ;;  %vm1035_vm12 = vcmp.eq.f32.partialorder %v1034_v37, 8.507059e+37 }
 0x1aa   : > { %v1052_v46 = vor.u32 1.1754944e-38, %v1051_v36  ;;  %vm1050_vm13 = vcmp.eq.f32.partialorder %v1049_v39, 8.507059e+37 }
 0x1ad   : > { %v1380_v27 = vpop.eup %1379 }
 0x1ae   : > { %v1382_v28 = vpop.eup %1381  ;;  %v1026_v29 = vmul.f32 %v1380_v27, %v1023_v25  ;;  %vm1031_vm6 = vweird.f32 %v1380_v27 }
 0x1af   : > { %v1041_v30 = vmul.f32 %v1382_v28, %v1024_v26  ;;  %vm1046_vm7 = vweird.f32 %v1382_v28  ;;  %vm1032_vm9 = vmor %vm1030_vm8, %vm1031_vm6 }
 0x1b0   : > { %v1027_v31 = vsub.f32 1.0, %v1026_v29  ;;  %vm1047_vm11 = vmor %vm1045_vm10, %vm1046_vm7 }
 0x1b1   : > { %v1042_v33 = vsub.f32 1.0, %v1041_v30 }
 0x1b2   : > { %v1028_v34 = vmul.f32 %v1380_v27, %v1027_v31 }
 0x1b3   : > { %v1043_v38 = vmul.f32 %v1382_v28, %v1042_v33 }
 0x1b4   : > { %v1029_v41 = vadd.f32 %v1380_v27, %v1028_v34 }
 0x1b5   : > { %v1044_v43 = vadd.f32 %v1382_v28, %v1043_v38 }
 0x1b6   : > { %v1033_v44 = vsel %vm1032_vm9, %v1380_v27, %v1029_v41 }
 0x1b7   : > { %v1048_v48 = vsel %vm1047_vm11, %v1382_v28, %v1044_v43  ;;  %v1038_v49 = vsel %vm1035_vm12, %v1037_v45, %v1033_v44 }
 0x1b8   : > { %v1053_v50 = vsel %vm1050_vm13, %v1052_v46, %v1048_v48  ;;  %v1055_v53 = vmul.f32 %v1038_v49, %v919_v51 }
 0x1b9   : > { %v1056_v52 = vmul.f32 %v1053_v50, %v920_v47 }
 0x1bb   : > { %v1059_v54 = vrot.slane %v1056_v52, 4 }
 0x1bd   : > { %v1060_v55 = vsel %vm583_vm1, %v1055_v53, %v1059_v54 }
 0x1be   : > { %v1062_v56 = vadd.f32 %v1060_v55, %v1801_v0 }
 0x1c0   : > { %1063 = vst [vmem:[%s549_s18] sm:$0xff] %v1062_v56 }
 0x1c1   : > { %1530 = shalt.err (!%p1527_p0)
}
 0x1c2   : > { %1288 = dma.vmem_to_hbm [thread:$0]  (%p1751_p7), %s1081_s19, 128, %s1083_s8, %s1065_s22  }
 0x1c3 PF: > { %s1956_s10 = sld [smem:[#allocation16_spill]]  ;;  %p1305_p3 = pnand %p1217_p9, %p1717_p6 }
 0x1c5   : > { %p1306_p5 = pneg %p1305_p3 }
 0x1c9   : > { %s1094_s14 = sand.u32 1, %s1956_s10  }
 0x1ca   : > { %s1095_s16 = scalar_lea.sflag [#allocation4], %s1094_s14 }
 0x1cb   : > { %1572 = dma.done.wait (%p1306_p5), %s1095_s16, 128  }
 0x1cc   : > { %1574 = vsyncadd (%p1306_p5), %s1095_s16, 4294967168  ;;  %s33_s30 = sadd.s32 1, %s1597_s30   ;;  %s1958_s17 = sld [smem:[#allocation17_spill]] }
 0x1cd   : > { %p30_p10 = scmp.ge.s32.totalorder %s33_s30, 4   ;;  %s1959_s27 = sld [smem:[#allocation23_spill]] }
 0x1ce   : > { %s1960_s28 = sld [smem:[#allocation19_spill]]  ;;  %s1962_s25 = smov %s1581_s26 }
 0x1cf   : > { %s1961_s29 = sld [smem:[#allocation21_spill]]  ;;  %32 = sbr.rel (!%p30_p10) target bundleno = 16 (0x10), region = 138 }
 0x1d2   : > { %s1963_s26 = smov %s1958_s17 }
 0x1d4   :  { %1101 = vsyncpa [#allocation3], 1 }
 0x1d5   :  { %1103 = vsyncpa [#allocation3 + $0x1], 1 }
 0x1d6   :  { %1104 = vsyncpa [#allocation6], 1 }
 0x1d7   :  { %1106 = vsyncpa [#allocation6 + $0x1], 1 }
 0x1d8   :  { %1107 = vsyncpa [#allocation9], 1 }
 0x1d9   :  { %1108 = vsyncpa [#allocation4], 1 }
 0x1da   :  { %1110 = vsyncpa [#allocation4 + $0x1], 1 }

</bundles_post_ra>
